<compile_context>
chip_gen: v6e
topology: v6e:2x2x1
jax: 0.10.0
libtpu: 0.0.40
codegen_flags: <defaults>
</compile_context>

<pallas_src>
import functools
import re

import jax
import jax.numpy as jnp
import numpy as np
from jax.experimental import pallas as pl
from jax.experimental.pallas import tpu as pltpu


def _bahdanau_kernel(q_ref, k_ref, wa_ref, ua_ref, bias_ref, va_ref, bv_ref,
                     ctx_ref, wts_ref, qb_ref, *, bb, ts, hidden, tanh_dtype):
    # q_ref: (BB, H) f32            k_ref: (BB, TS, H) f32
    # wa_ref / ua_ref: (H, H) bf16  pre-transposed so x @ W^T == x @ ref
    # bias_ref: (1, H) f32          fused Wa.bias + Ua.bias
    # va_ref: (1, H) f32            Va weight row
    # bv_ref: (1,) f32 in SMEM      Va bias scalar
    # ctx_ref: (BB, H) f32 output   resident across the seq axis (accumulator)
    # wts_ref: (BB, TS) f32 output  written per seq step
    # qb_ref: (BB, H) f32 scratch   Wa(query) + fused bias, computed once per batch block
    s_idx = pl.program_id(1)

    @pl.when(s_idx == 0)
    def _init():
        q_bf = q_ref[...].astype(jnp.bfloat16)
        qp = jnp.dot(q_bf, wa_ref[...], preferred_element_type=jnp.float32)
        qb_ref[...] = qp + bias_ref[...]                 # fold fused bias once (B*H add)
        ctx_ref[...] = jnp.zeros_like(ctx_ref)

    k_f32 = k_ref[...]                                                   # (BB, TS, H)
    k_bf = k_f32.reshape(bb * ts, hidden).astype(jnp.bfloat16)
    k_proj = jnp.dot(k_bf, ua_ref[...],
                     preferred_element_type=jnp.float32).reshape(bb, ts, hidden)

    # tanh in bf16 on v6e/v7x (EUP bf16 path); only NaN propagation matters.
    t = jnp.tanh((k_proj + qb_ref[...][:, None, :]).astype(tanh_dtype))
    t = t.astype(jnp.float32)

    # Va(t): multiply + lane reduce, keepdims so the weight stays (BB, TS, 1)
    # on the hot (context) path -> no lane->sublane relayout before the big mul.
    s1 = jnp.sum(t * va_ref[...], axis=-1, keepdims=True) + bv_ref[0]    # (BB,TS,1)

    # softmax over the original trailing size-1 axis of (B,1,S,1): exactly 1.0
    # for finite scores; NaN/Inf scores still produce NaN (matches torch.softmax).
    w3 = (s1 - s1) + 1.0                                                 # (BB,TS,1)

    # context = bmm(weights, keys): broadcast-multiply + sublane reduce over TS.
    ctx_ref[...] += jnp.sum(w3 * k_f32, axis=1)                          # (BB, H)
    wts_ref[...] = w3[..., 0]                                            # (BB, TS)


def _tpu_generation():
    try:
        kind = jax.devices()[0].device_kind.lower()
    except Exception:
        return None
    m = re.search(r"v(\d+)", kind)
    return int(m.group(1)) if m else None


def _pick_batch_blocks(batch, generation):
    # v7x has 2 TensorCores: split the "parallel" batch axis when alignment allows
    # ((8,128) rule: the per-block sublane dim BB must be a multiple of 8).
    if generation is not None and generation >= 7 and batch % 2 == 0 and (batch // 2) % 8 == 0:
        return 2
    return 1


def _pick_seq_tile(seq, bb, hidden, vmem_limit_bytes):
    """Largest multiple-of-128 divisor of S fitting the VMEM budget, else full S."""
    budget = vmem_limit_bytes if vmem_limit_bytes is not None else (32 << 20)
    # ~ double-buffered f32 keys tile + a few same-size f32 intermediates per step.
    target_rows = max(128, budget // (8 * bb * hidden * 4))
    candidates = [t for t in range(128, seq + 1, 128) if seq % t == 0]
    if not candidates:
        return seq            # single seq step; full-dim blocks are layout-exempt
    fitting = [t for t in candidates if t <= target_rows]
    return max(fitting) if fitting else min(candidates)


@functools.partial(jax.jit, static_argnames=("num_batch_blocks", "seq_tile",
                                              "use_bf16_tanh", "vmem_limit_bytes"))
def _bahdanau_impl(query, keys, wa_w, wa_b, ua_w, ua_b, va_w, va_b, *,
                   num_batch_blocks, seq_tile, use_bf16_tanh, vmem_limit_bytes):
    B, _, _, H = query.shape
    S = keys.shape[2]
    BB = B // num_batch_blocks
    TS = seq_tile
    n_seq = S // TS

    # Lane-dense operands: batch on sublanes, hidden on lanes; keys stay 3-D so
    # the seq axis can be tiled independently of batch.
    q2 = query.reshape(B, H)
    k3 = keys.reshape(B, S, H)

    wa_t = wa_w.T.astype(jnp.bfloat16)               # (H, H) pre-cast for the MXU
    ua_t = ua_w.T.astype(jnp.bfloat16)               # (H, H)
    va_row = va_w.reshape(1, H).astype(jnp.float32)  # (1, H)
    bias = (wa_b + ua_b).reshape(1, H).astype(jnp.float32)   # fused Wa/Ua biases
    bv = va_b.reshape(1).astype(jnp.float32)         # scalar -> SMEM

    kernel = functools.partial(
        _bahdanau_kernel, bb=BB, ts=TS, hidden=H,
        tanh_dtype=jnp.bfloat16 if use_bf16_tanh else jnp.float32)

    grid = (num_batch_blocks, n_seq)
    in_specs = [
        pl.BlockSpec((BB, H), lambda b, s: (b, 0)),            # query rows
        pl.BlockSpec((BB, TS, H), lambda b, s: (b, s, 0)),     # keys tile (streamed)
        pl.BlockSpec((H, H), lambda b, s: (0, 0)),             # Wa^T (bf16, resident)
        pl.BlockSpec((H, H), lambda b, s: (0, 0)),             # Ua^T (bf16, resident)
        pl.BlockSpec((1, H), lambda b, s: (0, 0)),             # fused bias
        pl.BlockSpec((1, H), lambda b, s: (0, 0)),             # Va row
        pl.BlockSpec(memory_space=pltpu.MemorySpace.SMEM),     # Va bias scalar
    ]
    out_specs = [
        pl.BlockSpec((BB, H), lambda b, s: (b, 0)),            # context accumulator
        pl.BlockSpec((BB, TS), lambda b, s: (b, s)),           # weights tile
    ]
    out_shape = [
        jax.ShapeDtypeStruct((B, H), jnp.float32),
        jax.ShapeDtypeStruct((B, S), jnp.float32),
    ]
    scratch_shapes = [pltpu.VMEM((BB, H), jnp.float32)]        # Wa(q) + bias

    cost = pl.CostEstimate(
        flops=2 * B * H * H + 2 * B * S * H * H + 6 * B * S * H,
        transcendentals=B * S * H,
        bytes_accessed=4 * (B * H + B * S * H + B * H + B * S)
                       + 2 * (2 * H * H) + 4 * (2 * H + 1),
    )

    context2d, weights2d = pl.pallas_call(
        kernel,
        grid=grid,
        in_specs=in_specs,
        out_specs=out_specs,
        out_shape=out_shape,
        scratch_shapes=scratch_shapes,
        compiler_params=pltpu.CompilerParams(
            dimension_semantics=("parallel", "arbitrary"),
            vmem_limit_bytes=vmem_limit_bytes),
        cost_estimate=cost,
    )(q2, k3, wa_t, ua_t, bias, va_row, bv)

    return context2d.reshape(B, 1, H), weights2d.reshape(B, 1, S)


def bahdanau_attention(query, keys, wa_w, wa_b, ua_w, ua_b, va_w, va_b,
                       *, num_batch_blocks=None, seq_tile=None):
    """query: (B,1,1,H), keys: (B,1,S,H) -> (context (B,1,H), weights (B,1,S))."""
    B, _, _, H = query.shape
    S = keys.shape[2]

    gen = _tpu_generation()
    if gen is not None and gen >= 7:
        vmem_limit = 48 << 20                 # v7x: 64 MiB physical per TC
    elif gen is not None:
        vmem_limit = 100 << 20                # v5e/v6e: 128 MiB physical
    else:
        vmem_limit = None
    use_bf16_tanh = gen is not None and gen >= 6   # v5e has no bf16 EUP path

    nb = num_batch_blocks if num_batch_blocks is not None else _pick_batch_blocks(B, gen)
    if B % nb != 0:
        raise ValueError("num_batch_blocks must divide the batch size")
    bb = B // nb
    if nb > 1 and bb % 8 != 0:
        raise ValueError("with num_batch_blocks > 1, B/num_batch_blocks must be a multiple of 8")

    ts = seq_tile if seq_tile is not None else _pick_seq_tile(S, bb, H, vmem_limit)
    if S % ts != 0:
        raise ValueError("seq_tile must divide the sequence length")
    if ts != S and ts % 128 != 0:
        raise ValueError("seq_tile must be a multiple of 128 (or the full sequence length)")

    return _bahdanau_impl(query, keys, wa_w, wa_b, ua_w, ua_b, va_w, va_b,
                          num_batch_blocks=nb, seq_tile=ts,
                          use_bf16_tanh=use_bf16_tanh, vmem_limit_bytes=vmem_limit)


def _reference(query, keys, wa_w, wa_b, ua_w, ua_b, va_w, va_b):
    """Pure-JAX reference mirroring the PyTorch forward, for validation."""
    wq = query @ wa_w.T + wa_b                       # (B,1,1,H)
    uk = keys @ ua_w.T + ua_b                        # (B,1,S,H)
    scores = jnp.tanh(wq + uk) @ va_w.T + va_b       # (B,1,S,1)
    weights = jax.nn.softmax(scores, axis=-1)        # (B,1,S,1) -> ones
    weights = jnp.squeeze(weights, axis=3)           # (B,1,S)
    k = jnp.squeeze(keys, axis=1)                    # (B,S,H)
    context = jnp.einsum('bqs,bsh->bqh', weights, k,
                         precision=jax.lax.Precision.HIGHEST)   # (B,1,H)
    context = jnp.sum(context, axis=1, keepdims=True)
    return context, weights


if __name__ == "__main__":
    B, S, H = 2, 8, 32

    key = jax.random.PRNGKey(0)
    k_q, k_k, k_waw, k_wab, k_uaw, k_uab, k_vaw, k_vab = jax.random.split(key, 8)

    # Deterministic parameter init (Linear layer shapes from __init__):
    bound = 1.0 / np.sqrt(H)
    wa_w = jax.random.uniform(k_waw, (H, H), jnp.float32, -bound, bound)
    wa_b = jax.random.uniform(k_wab, (H,),   jnp.float32, -bound, bound)
    ua_w = jax.random.uniform(k_uaw, (H, H), jnp.float32, -bound, bound)
    ua_b = jax.random.uniform(k_uab, (H,),   jnp.float32, -bound, bound)
    va_w = jax.random.uniform(k_vaw, (1, H), jnp.float32, -bound, bound)
    va_b = jax.random.uniform(k_vab, (1,),   jnp.float32, -bound, bound)

    query = jax.random.normal(k_q, (B, 1, 1, H), jnp.float32)
    keys = jax.random.normal(k_k, (B, 1, S, H), jnp.float32)

    context, weights = bahdanau_attention(query, keys, wa_w, wa_b, ua_w, ua_b,
                                          va_w, va_b)
    jax.block_until_ready((context, weights))

    ref_ctx, ref_w = _reference(query, keys, wa_w, wa_b, ua_w, ua_b, va_w, va_b)
    np.testing.assert_allclose(np.asarray(context), np.asarray(ref_ctx), rtol=1e-5, atol=1e-5)
    np.testing.assert_allclose(np.asarray(weights), np.asarray(ref_w), rtol=1e-5, atol=1e-5)

    print("KERNEL_OK")
</pallas_src>

<mosaic_0001>
module attributes {stable_mosaic.version = 11 : i64} {
  func.func @_bahdanau_kernel(%arg0: i32, %arg1: i32, %arg2: memref<2x32xf32, #tpu.memory_space<vmem>>, %arg3: memref<2x8x32xf32, #tpu.memory_space<vmem>>, %arg4: memref<32x32xbf16, #tpu.memory_space<vmem>>, %arg5: memref<32x32xbf16, #tpu.memory_space<vmem>>, %arg6: memref<1x32xf32, #tpu.memory_space<vmem>>, %arg7: memref<1x32xf32, #tpu.memory_space<vmem>>, %arg8: memref<1xf32, #tpu.memory_space<smem>>, %arg9: memref<2x32xf32, #tpu.memory_space<vmem>>, %arg10: memref<2x8xf32, #tpu.memory_space<vmem>>, %arg11: memref<2x32xf32, #tpu.memory_space<vmem>>) attributes {dimension_semantics = [#tpu.dimension_semantics<parallel>, #tpu.dimension_semantics<arbitrary>], iteration_bounds = array<i64: 1, 1>, scalar_prefetch = 0 : i64, scratch_operands = 1 : i64, tpu.core_type = #tpu.core_type<tc>, window_params = [{transform_indices = @transform_0, window_bounds = array<i64: 2, 32>}, {transform_indices = @transform_1, window_bounds = array<i64: 2, 8, 32>}, {pipeline_mode = #tpu.pipeline_mode<synchronous>, transform_indices = @transform_2, window_bounds = array<i64: 32, 32>}, {pipeline_mode = #tpu.pipeline_mode<synchronous>, transform_indices = @transform_3, window_bounds = array<i64: 32, 32>}, {pipeline_mode = #tpu.pipeline_mode<synchronous>, transform_indices = @transform_4, window_bounds = array<i64: 1, 32>}, {pipeline_mode = #tpu.pipeline_mode<synchronous>, transform_indices = @transform_5, window_bounds = array<i64: 1, 32>}, {transform_indices = @transform_6, window_bounds = array<i64: 1>}, {transform_indices = @transform_7, window_bounds = array<i64: 2, 32>}, {transform_indices = @transform_8, window_bounds = array<i64: 2, 8>}]} {
    %c0_i32 = arith.constant 0 : i32
    %0 = arith.cmpi eq, %arg1, %c0_i32 : i32
    %1 = arith.extui %0 : i1 to i32
    %c0_i32_0 = arith.constant 0 : i32
    %2 = arith.cmpi ne, %1, %c0_i32_0 : i32
    scf.if %2 {
      %c0_19 = arith.constant 0 : index
      %c0_20 = arith.constant 0 : index
      %34 = vector.load %arg2[%c0_19, %c0_20] : memref<2x32xf32, #tpu.memory_space<vmem>>, vector<2x32xf32>
      %35 = arith.truncf %34 : vector<2x32xf32> to vector<2x32xbf16>
      %c0_21 = arith.constant 0 : index
      %c0_22 = arith.constant 0 : index
      %36 = vector.load %arg4[%c0_21, %c0_22] : memref<32x32xbf16, #tpu.memory_space<vmem>>, vector<32x32xbf16>
      %cst_23 = arith.constant dense<0.000000e+00> : vector<2x32xf32>
      %37 = tpu.matmul %35, %36, %cst_23 {dimension_numbers = #tpu.dot_dimension_numbers<[1], [0], [0], [1], [0, 0, 1, 1], [], []>} : vector<2x32xbf16>, vector<32x32xbf16>, vector<2x32xf32> -> vector<2x32xf32>
      %c0_24 = arith.constant 0 : index
      %c0_25 = arith.constant 0 : index
      %38 = vector.load %arg6[%c0_24, %c0_25] : memref<1x32xf32, #tpu.memory_space<vmem>>, vector<1x32xf32>
      %39 = vector.broadcast %38 : vector<1x32xf32> to vector<2x32xf32>
      %40 = arith.addf %37, %39 : vector<2x32xf32>
      %c0_26 = arith.constant 0 : index
      %c0_27 = arith.constant 0 : index
      %41 = vector.load %arg11[%c0_26, %c0_27] : memref<2x32xf32, #tpu.memory_space<vmem>>, vector<2x32xf32>
      tpu.vector_store %arg11[%c0_26, %c0_27], %40 {strides = array<i32>} : memref<2x32xf32, #tpu.memory_space<vmem>>, vector<2x32xf32>,
      %cst_28 = arith.constant 0.000000e+00 : f32
      %42 = vector.broadcast %cst_28 : f32 to vector<2x32xf32>
      %c0_29 = arith.constant 0 : index
      %c0_30 = arith.constant 0 : index
      %43 = vector.load %arg9[%c0_29, %c0_30] : memref<2x32xf32, #tpu.memory_space<vmem>>, vector<2x32xf32>
      tpu.vector_store %arg9[%c0_29, %c0_30], %42 {strides = array<i32>} : memref<2x32xf32, #tpu.memory_space<vmem>>, vector<2x32xf32>,
    } else {
    }
    %c0 = arith.constant 0 : index
    %c0_1 = arith.constant 0 : index
    %c0_2 = arith.constant 0 : index
    %3 = vector.load %arg3[%c0, %c0_1, %c0_2] : memref<2x8x32xf32, #tpu.memory_space<vmem>>, vector<2x8x32xf32>
    %4 = vector.shape_cast %3 : vector<2x8x32xf32> to vector<16x32xf32>
    %5 = arith.truncf %4 : vector<16x32xf32> to vector<16x32xbf16>
    %c0_3 = arith.constant 0 : index
    %c0_4 = arith.constant 0 : index
    %6 = vector.load %arg5[%c0_3, %c0_4] : memref<32x32xbf16, #tpu.memory_space<vmem>>, vector<32x32xbf16>
    %cst = arith.constant dense<0.000000e+00> : vector<16x32xf32>
    %7 = tpu.matmul %5, %6, %cst {dimension_numbers = #tpu.dot_dimension_numbers<[1], [0], [0], [1], [0, 0, 1, 1], [], []>} : vector<16x32xbf16>, vector<32x32xbf16>, vector<16x32xf32> -> vector<16x32xf32>
    %8 = vector.shape_cast %7 : vector<16x32xf32> to vector<2x8x32xf32>
    %c0_5 = arith.constant 0 : index
    %c0_6 = arith.constant 0 : index
    %9 = vector.load %arg11[%c0_5, %c0_6] : memref<2x32xf32, #tpu.memory_space<vmem>>, vector<2x32xf32>
    %10 = vector.shape_cast %9 : vector<2x32xf32> to vector<2x1x32xf32>
    %11 = vector.broadcast %10 : vector<2x1x32xf32> to vector<2x8x32xf32>
    %12 = arith.addf %8, %11 : vector<2x8x32xf32>
    %13 = math.tanh %12 : vector<2x8x32xf32>
    %c0_7 = arith.constant 0 : index
    %c0_8 = arith.constant 0 : index
    %14 = vector.load %arg7[%c0_7, %c0_8] : memref<1x32xf32, #tpu.memory_space<vmem>>, vector<1x32xf32>
    %15 = vector.shape_cast %14 : vector<1x32xf32> to vector<1x1x32xf32>
    %16 = vector.broadcast %15 : vector<1x1x32xf32> to vector<2x8x32xf32>
    %17 = arith.mulf %13, %16 : vector<2x8x32xf32>
    %cst_9 = arith.constant dense<0.000000e+00> : vector<2x8xf32>
    %18 = vector.multi_reduction <add>, %17, %cst_9 [2] : vector<2x8x32xf32> to vector<2x8xf32>
    %19 = vector.shape_cast %18 : vector<2x8xf32> to vector<2x8x1xf32>
    %c0_10 = arith.constant 0 : index
    %20 = memref.load %arg8[%c0_10] : memref<1xf32, #tpu.memory_space<smem>>
    %21 = vector.broadcast %20 : f32 to vector<2x8x1xf32>
    %22 = arith.addf %19, %21 : vector<2x8x1xf32>
    %23 = arith.subf %22, %22 : vector<2x8x1xf32>
    %cst_11 = arith.constant 1.000000e+00 : f32
    %24 = vector.broadcast %cst_11 : f32 to vector<2x8x1xf32>
    %25 = arith.addf %23, %24 : vector<2x8x1xf32>
    %c0_12 = arith.constant 0 : index
    %c0_13 = arith.constant 0 : index
    %26 = vector.load %arg9[%c0_12, %c0_13] : memref<2x32xf32, #tpu.memory_space<vmem>>, vector<2x32xf32>
    %27 = vector.broadcast %25 : vector<2x8x1xf32> to vector<2x8x32xf32>
    %28 = arith.mulf %27, %3 : vector<2x8x32xf32>
    %cst_14 = arith.constant dense<0.000000e+00> : vector<2x32xf32>
    %29 = vector.multi_reduction <add>, %28, %cst_14 [1] : vector<2x8x32xf32> to vector<2x32xf32>
    %30 = arith.addf %26, %29 : vector<2x32xf32>
    %c0_15 = arith.constant 0 : index
    %c0_16 = arith.constant 0 : index
    %31 = vector.load %arg9[%c0_15, %c0_16] : memref<2x32xf32, #tpu.memory_space<vmem>>, vector<2x32xf32>
    tpu.vector_store %arg9[%c0_15, %c0_16], %30 {strides = array<i32>} : memref<2x32xf32, #tpu.memory_space<vmem>>, vector<2x32xf32>,
    %32 = vector.shape_cast %25 : vector<2x8x1xf32> to vector<2x8xf32>
    %c0_17 = arith.constant 0 : index
    %c0_18 = arith.constant 0 : index
    %33 = vector.load %arg10[%c0_17, %c0_18] : memref<2x8xf32, #tpu.memory_space<vmem>>, vector<2x8xf32>
    tpu.vector_store %arg10[%c0_17, %c0_18], %32 {strides = array<i32>} : memref<2x8xf32, #tpu.memory_space<vmem>>, vector<2x8xf32>,
    return
  }
  func.func @transform_0(%arg0: i32, %arg1: i32) -> (i32, i32) {
    %c0_i32 = arith.constant 0 : i32
    %c0_i32_0 = arith.constant 0 : i32
    return %arg0, %c0_i32 : i32, i32
  }
  func.func @transform_1(%arg0: i32, %arg1: i32) -> (i32, i32, i32) {
    %c0_i32 = arith.constant 0 : i32
    %c0_i32_0 = arith.constant 0 : i32
    return %arg0, %arg1, %c0_i32 : i32, i32, i32
  }
  func.func @transform_2(%arg0: i32, %arg1: i32) -> (i32, i32) {
    %c0_i32 = arith.constant 0 : i32
    %c0_i32_0 = arith.constant 0 : i32
    %c0_i32_1 = arith.constant 0 : i32
    return %c0_i32, %c0_i32_0 : i32, i32
  }
  func.func @transform_3(%arg0: i32, %arg1: i32) -> (i32, i32) {
    %c0_i32 = arith.constant 0 : i32
    %c0_i32_0 = arith.constant 0 : i32
    %c0_i32_1 = arith.constant 0 : i32
    return %c0_i32, %c0_i32_0 : i32, i32
  }
  func.func @transform_4(%arg0: i32, %arg1: i32) -> (i32, i32) {
    %c0_i32 = arith.constant 0 : i32
    %c0_i32_0 = arith.constant 0 : i32
    %c0_i32_1 = arith.constant 0 : i32
    return %c0_i32, %c0_i32_0 : i32, i32
  }
  func.func @transform_5(%arg0: i32, %arg1: i32) -> (i32, i32) {
    %c0_i32 = arith.constant 0 : i32
    %c0_i32_0 = arith.constant 0 : i32
    %c0_i32_1 = arith.constant 0 : i32
    return %c0_i32, %c0_i32_0 : i32, i32
  }
  func.func @transform_6(%arg0: i32, %arg1: i32) -> i32 {
    %c0_i32 = arith.constant 0 : i32
    %c0_i32_0 = arith.constant 0 : i32
    return %c0_i32 : i32
  }
  func.func @transform_7(%arg0: i32, %arg1: i32) -> (i32, i32) {
    %c0_i32 = arith.constant 0 : i32
    %c0_i32_0 = arith.constant 0 : i32
    return %arg0, %c0_i32 : i32, i32
  }
  func.func @transform_8(%arg0: i32, %arg1: i32) -> (i32, i32) {
    %c0_i32 = arith.constant 0 : i32
    return %arg0, %arg1 : i32, i32
  }
}

</mosaic_0001>

<bundles_post_ra>
// kernel: _bahdanau_impl.1
= control target key start
LH: loop header
LB: loop body
LE: loop exit
PB: predicated region body
PF: predicated region fallthrough
CT: control target
= control target key end

     0   :  { %15 = vsyncpa [#allocation5], 0  ;;  %v390_v1 = vmov 0.0   ;;  %vm391_vm0 = vmmov 0   ;;  %s491_s0 = inlined_call_operand.vmem [shape: f32[2,32], index: 0, kind: input, shape index: {}]   ;;  %s492_s1 = inlined_call_operand.vmem [shape: f32[2,8,32], index: 1, kind: input, shape index: {}]   ;;  %s493_s2 = inlined_call_operand.vmem [shape: bf16[32,32], index: 2, kind: input, shape index: {}]   ;;  %s494_s3 = inlined_call_operand.vmem [shape: bf16[32,32], index: 3, kind: input, shape index: {}]   ;;  %s495_s4 = inlined_call_operand.vmem [shape: f32[1,32], index: 4, kind: input, shape index: {}]   ;;  %s496_s5 = inlined_call_operand.vmem [shape: f32[1,32], index: 5, kind: input, shape index: {}]   ;;  %s497_s6 = inlined_call_operand.<no memory space> [shape: f32[1], index: 6, kind: input, shape index: {}]   ;;  %s498_s7 = inlined_call_operand.hbm [shape: f32[2,32], index: 7, kind: output, shape index: {0}]   ;;  %s499_s8 = inlined_call_operand.hbm [shape: f32[2,8], index: 8, kind: output, shape index: {1}]  }
   0x1   :  { %v338_v0 = vld [vmem:[%s493_s2 + $0x8] sm:$0xff]   ;;  %317 = vmatprep.subr.bf16.mxu0 %v390_v1  ;;  %v339_v2 = vld [vmem:[%s493_s2] sm:$0xff]   ;;  %325 = vmatprep.subr.bf16.mxu1 %v390_v1 }
   0x2   :  { %318 = vmatpush3.bf16.msra.mxu0 %v338_v0  ;;  %321 = vmatprep.mubr.msk.bf16.mxu0 %vm391_vm0, %v390_v1  ;;  %v36_v3 = vld [vmem:[%s491_s0] sm:$0x3]  ;;  %v340_v4 = vld [vmem:[%s494_s3 + $0x8] sm:$0xff]  }
   0x3   :  { %319 = vmatprep.subr.bf16.mxu0 %v390_v1  ;;  %329 = vmatprep.mubr.msk.bf16.mxu1 %vm391_vm0, %v390_v1  ;;  %v341_v5 = vld [vmem:[%s494_s3] sm:$0xff]   ;;  %v461_v7 = vld [vmem:[%s492_s1 + $0x8] sm:$0xff]  ;;  %v37_v8 = vpack.c.bf16 %v36_v3, %v36_v3 }
   0x4   :  { %326 = vmatpush3.bf16.msra.mxu1 %v340_v4  ;;  %v108_v6 = vld [vmem:[%s492_s1] sm:$0xff] }
   0x5   :  { %327 = vmatprep.subr.bf16.mxu1 %v390_v1 }
   0x6   :  { %16 = vsyncpa [#allocation7], 0  ;;  %320 = vmatpush3.bf16.msra.mxu0 %v339_v2  ;;  %vm61_vm1 = vcmask 261120   ;;  %v110_v9 = vpack.c.bf16 %v461_v7, %v108_v6  ;;  %vm105_vm2 = vcmask 254976   ;;  %v185_v10 = vlaneseq  ;;  %v302_v14 = vld [vmem:[%s495_s4] ss:$0 sm:$0xff] }
   0x7   :  { %107 = vst.msk [vmem:[#allocation4] sm:$0x3] %vm105_vm2, %v390_v1  ;;  %v392_v15 = vmov 1966171168   ;;  %v310_v37 = vld [vmem:[%s496_s5] ss:$0 sm:$0xff]  ;;  %v226_v44 = vstv %s497_s6 }
   0x8   :  { %328 = vmatpush3.bf16.msra.mxu1 %v341_v5  ;;  %v186_v11 = vshrl.u32 %v185_v10, 7  ;;  %v261_v12 = vand.u32 127, %v185_v10  ;;  %v183_v16 = vunpack.c.l.s4 %v392_v15  ;;  %s393_s5 = smov [#allocation6]   ;;  %vm252_vm3 = vcmask 1041409  }
   0x9   :  { %322 = vmatmul.mubr.msk.bf16.vlgmr.msra.gmra.mxu0 %vm61_vm1, %v37_v8  ;;  %s290_s20 = sshll.u32 %s393_s5, 4  ;;  %vm272_vm4 = vcmask 58368   ;;  %s291_s20 = int_to_ptr.vmem [resolvable:$true] %s290_s20 }
   0xa   :  { %v264_v13 = vsub.s32 %v261_v12, %v186_v11  ;;  %v184_v21 = vunpack.c.0.s8 %v183_v16  ;;  %v198_v28 = vsub.s32 0, %v186_v11  ;;  %s346_s6 = scalar_lea.vmem %s291_s20, 32  ;;  %p351_p1 = scmp.lt.s32.totalorder %s291_s20, %s291_s20 }
   0xb   :  { %330 = vmatmul.mubr.msk.bf16.vlgmr.msra.gmra.mxu1 %vm61_vm1, %v110_v9  ;;  %p347_p0 = scmp.ne.s32.totalorder %s291_s20, %s346_s6  ;;  %p352_p2 = scmp.lt.s32.totalorder %s346_s6, %s346_s6 }
   0xc   :  { %v187_v26 = vsub.s32 %v184_v21, %v186_v11 }
   0xd   :  { %p353_p3 = por %p352_p2, %p351_p1 }
   0xf   :  { %p354_p4 = pnand %p353_p3, %p347_p0 }
  0xc9   :  { %v99_v17 = vpop.f32.mrf.mxu0 }
  0xca   :  { %v100_v18 = vadd.f32 %v302_v14, %v99_v17 }
  0xcb   :  { %v323_v19 = vpop.f32.mrf.mxu0  ;;  %v165_v20 = vpop.f32.mrf.mxu1 }
  0xcc   :  { %106 = vst.msk [vmem:[#allocation2] sm:$0x3] %vm105_vm2, %v100_v18 }
  0xcd   :  { %v102_v22 = vpop.f32.mrf.mxu0  ;;  %v331_v23 = vpop.f32.mrf.mxu1 }
  0xcf   :  { %v324_v24 = vpop.f32.mrf.mxu0  ;;  %v168_v25 = vpop.f32.mrf.mxu1 }
  0xd1   :  { %v332_v27 = vpop.f32.mrf.mxu1 }
  0xd3   :  { %v309_v29 = vld.sshfl [vmem:[#allocation2] sm:$0x11 pattern:$0x75316420] }
  0xd4   :  { %v188_v30 = vrot.slane %v309_v29, %v187_v26  ;;  %v181_v31 = vcombine.high %v309_v29, %v309_v29 }
  0xd6   :  { %v199_v32 = vrot.slane %v188_v30, %v198_v28  ;;  %v195_v33 = vrot.slane %v181_v31, %v187_v26 }
  0xd8   :  { %v206_v34 = vadd.f32 %v199_v32, %v165_v20  ;;  %v203_v35 = vrot.slane %v195_v33, %v198_v28 }
  0xda   :  { %342 = vtanh.f32 %v206_v34  ;;  %v207_v36 = vadd.f32 %v203_v35, %v168_v25 }
  0xdc   :  { %344 = vtanh.f32 %v207_v36 }
  0xe7   :  { %v343_v38 = vpop.eup %342 }
  0xe8   :  { %v217_v39 = vmul.f32 %v343_v38, %v310_v37 }
  0xe9   :  { %v345_v40 = vpop.eup %344 }
  0xea   :  { %v219_v41 = vsel %vm61_vm1, %v217_v39, 0.0  ;;  %v218_v42 = vmul.f32 %v345_v40, %v310_v37 }
  0xeb   :  { %220 = vadd.xlane.f32.xlu0 %v219_v41 }
  0xec   :  { %v222_v43 = vsel %vm61_vm1, %v218_v42, 0.0 }
  0xef   :  { %223 = vadd.xlane.f32.xlu0 %v222_v43 }
 0x174   :  { %v221_v45 = vpop.xlane.xlu0 %220 }
 0x175   :  { %v227_v46 = vadd.f32 %v226_v44, %v221_v45 }
 0x177   :  { %v229_v47 = vsub.f32 %v227_v46, %v227_v46 }
 0x178   :  { %v224_v48 = vpop.xlane.xlu0 %223 }
 0x179   :  { %v231_v49 = vadd.f32 1.0, %v229_v47  ;;  %v228_v50 = vadd.f32 %v226_v44, %v224_v48 }
 0x17b   :  { %v234_v51 = vmul.f32 %v231_v49, %v108_v6  ;;  %v230_v52 = vsub.f32 %v228_v50, %v228_v50  ;;  %v265_v56 = vrot.slane %v231_v49, %v264_v13 }
 0x17d   :  { %v236_v53 = vsel %vm61_vm1, %v234_v51, 0.0  ;;  %v232_v54 = vadd.f32 1.0, %v230_v52 }
 0x17e   :  { %v237_v55 = vrot.slane %v236_v53, 4 }
 0x17f   :  { %v235_v57 = vmul.f32 %v232_v54, %v461_v7  ;;  %v269_v58 = vrot.slane %v232_v54, %v264_v13 }
 0x180   :  { %v238_v59 = vadd.f32 %v237_v55, %v236_v53 }
 0x181   :  { %v243_v60 = vsel %vm61_vm1, %v235_v57, 0.0  ;;  %v270_v61 = vsel %vm252_vm3, %v269_v58, %v265_v56 }
 0x182   :  { %v239_v62 = vrot.slane %v238_v59, 2  ;;  %v244_v63 = vrot.slane %v243_v60, 4  ;;  %273 = vst.msk [vmem:[#allocation6] sm:$0x3] %vm272_vm4, %v270_v61 }
 0x183   :  { %357 = shalt.err (!%p354_p4)
}
 0x184   :  { %293 = dma.vmem_to_hbm [thread:$0]  %s291_s20, 32, %s499_s8, [#allocation7]   ;;  %v240_v0 = vadd.f32 %v239_v62, %v238_v59  ;;  %v245_v1 = vadd.f32 %v244_v63, %v243_v60  ;;  %v233_v8 = vld [vmem:[#allocation4] sm:$0x3] }
 0x185   :  { %s394_s23 = smov [#allocation4]  }
 0x186   :  { %v246_v2 = vrot.slane %v245_v1, 2  ;;  %v241_v3 = vrot.slane %v240_v0, 1  ;;  %s280_s24 = sshll.u32 %s394_s23, 4  ;;  %s281_s24 = int_to_ptr.vmem [resolvable:$true] %s280_s24 }
 0x187   :  { %s366_s25 = scalar_lea.vmem %s281_s24, 32  ;;  %p371_p6 = scmp.lt.s32.totalorder %s281_s24, %s281_s24 }
 0x188   :  { %v247_v4 = vadd.f32 %v246_v2, %v245_v1  ;;  %v242_v6 = vadd.f32 %v241_v3, %v240_v0  ;;  %p367_p5 = scmp.ne.s32.totalorder %s281_s24, %s366_s25  ;;  %p372_p7 = scmp.lt.s32.totalorder %s366_s25, %s366_s25 }
 0x18a   :  { %v248_v5 = vrot.slane %v247_v4, 1  ;;  %p373_p8 = por %p372_p7, %p371_p6 }
 0x18c   :  { %v249_v7 = vadd.f32 %v248_v5, %v247_v4  ;;  %p374_p9 = pnand %p373_p8, %p367_p5 }
 0x18e   :  { %v253_v9 = vsel %vm252_vm3, %v249_v7, %v242_v6 }
 0x18f   :  { %v255_v10 = vadd.f32 %v253_v9, %v233_v8 }
 0x191   :  { %257 = vst.msk [vmem:[#allocation4] sm:$0x3] %vm105_vm2, %v255_v10 }
 0x192   :  { %377 = shalt.err (!%p374_p9)
}
 0x193   :  { %283 = dma.vmem_to_hbm [thread:$0]  %s281_s24, 32, %s498_s7, [#allocation5]  }
 0x194   :  { %386 = dma.done.wait [#allocation5], 32  }
 0x195   :  { %387 = vsyncadd [#allocation5], 4294967264 }
 0x196   :  { %388 = dma.done.wait [#allocation7], 32  }
 0x197   :  { %389 = vsyncadd [#allocation7], 4294967264 }
 0x198   :  { %300 = vsyncpa [#allocation5], 1 }
 0x199   :  { %301 = vsyncpa [#allocation7], 1 }

</bundles_post_ra>
